<compile_context>
chip_gen: v7x
topology: tpu7x:2x2x1
jax: 0.10.0
libtpu: 0.0.40
codegen_flags: <defaults>
</compile_context>

<pallas_src>
import functools
import math

import numpy as np
import jax
import jax.numpy as jnp
from jax.experimental import pallas as pl
from jax.experimental.pallas import tpu as pltpu


def _round_up(x, m):
    return (x + m - 1) // m * m


def _fastkan_net_kernel(layer_meta, x_ref, *refs):
    """Fused FastKAN network: all layers in one kernel invocation.

    layer_meta: static tuple of (scale, block_w) per layer, scale = 1/sqrt(2*var).
    x_ref:      (TB, D_in0) activation tile (f32).
    refs:       per layer (c_ref, w_ref, b_ref), then o_ref, then per-layer
                feature-slab scratch refs.
      c_ref:    (1, G_pad*D_in)  pre-scaled grid centers (f32)
      w_ref:    (K_pad, D_out)   packed [spline ; base] weights (MXU dtype)
      b_ref:    (1, D_out)       base-linear bias (f32)
      feat_ref: (TB, K_pad)      lane-aligned feature slab scratch (MXU dtype)
    """
    n_layers = len(layer_meta)
    param_refs = refs[:3 * n_layers]
    o_ref = refs[3 * n_layers]
    feat_refs = refs[3 * n_layers + 1:]

    h = x_ref[...].astype(jnp.float32)
    tb = h.shape[0]

    for l, (scale, bw) in enumerate(layer_meta):
        c_ref = param_refs[3 * l]
        w_ref = param_refs[3 * l + 1]
        b_ref = param_refs[3 * l + 2]
        feat_ref = feat_refs[l]
        feat_dtype = feat_ref.dtype

        d_in = h.shape[1]
        basis_w = c_ref.shape[1]                # multiple of bw (128-aligned)
        silu_w = feat_ref.shape[1] - basis_w    # 128-aligned chunk for silu
        rep = max(1, bw // d_in)                # grid points packed per lane block

        # ---- base path: silu(x), zero-padded into a 128-lane-aligned chunk ----
        silu = h * jax.nn.sigmoid(h)
        if silu_w > d_in:
            silu = jnp.concatenate(
                [silu, jnp.zeros((tb, silu_w - d_in), jnp.float32)], axis=1)
        feat_ref[:, basis_w:basis_w + silu_w] = silu.astype(feat_dtype)

        # ---- RBF basis, one aligned lane block at a time -----------------------
        # basis = exp(-(x - c)^2 / (2 var)) = exp(-(x*s - c*s)^2), s pre-folded.
        hs = h * scale                                  # (TB, d_in) — single small mul
        if rep > 1:
            hs = jnp.concatenate([hs] * rep, axis=1)    # (TB, bw), once per layer
        for j in range(basis_w // bw):
            diff = hs - c_ref[:, j * bw:(j + 1) * bw]   # row broadcast over TB
            feat_ref[:, j * bw:(j + 1) * bw] = jnp.exp(-(diff * diff)).astype(feat_dtype)

        # ---- single MXU contraction covering base + all spline terms ----------
        acc = jnp.dot(feat_ref[...], w_ref[...], preferred_element_type=jnp.float32)
        h = acc + b_ref[...].astype(jnp.float32)        # (TB, D_out), stays f32

    o_ref[...] = h.astype(o_ref.dtype)


def fastkan_forward_pallas(x, params, *, mxu_dtype=jnp.bfloat16,
                           batch_tile=512, min_grid_steps=2):
    """Run the whole FastKAN network in one Pallas kernel, tiled over batch.

    mxu_dtype: dtype of the MXU operands (packed weights + feature slab).
               bfloat16 (default) for ~2-4x matmul throughput and half the
               weight/scratch footprint; float32 for bit-tight validation.
    """
    B, d_in0 = x.shape
    d_out_last = params[-1]["w_cat"].shape[1]

    # Batch tile: multiple of 8 (f32 sublanes), capped by batch_tile, and small
    # enough to give >= min_grid_steps grid steps when B allows, so both v7x
    # TensorCores get work and I/O DMAs pipeline across steps.
    tb = min(batch_tile, _round_up(pl.cdiv(B, min_grid_steps), 8))
    tb = max(8, min(tb, _round_up(B, 8)))
    grid = (pl.cdiv(B, tb),)

    layer_meta = tuple((float(p["scale"]), int(p["block_w"])) for p in params)
    kernel = functools.partial(_fastkan_net_kernel, layer_meta)

    in_specs = [pl.BlockSpec((tb, d_in0), lambda b: (b, 0))]
    flat_inputs = [x]
    scratch_shapes = []
    for p in params:
        c_slab = p["c_slab_scaled"]
        w_cat = p["w_cat"].astype(mxu_dtype)   # TODO(synk): pre-pack bf16 offline
        bias = p["b_base2d"]
        in_specs += [
            pl.BlockSpec(c_slab.shape, lambda b: (0, 0)),
            pl.BlockSpec(w_cat.shape, lambda b: (0, 0)),
            pl.BlockSpec(bias.shape, lambda b: (0, 0)),
        ]
        flat_inputs += [c_slab, w_cat, bias]
        scratch_shapes.append(pltpu.VMEM((tb, w_cat.shape[0]), mxu_dtype))

    # NOTE: all layers' weights stay resident in VMEM (constant index_map) —
    # fine at these sizes; for much larger FastKANs move layers onto an
    # "arbitrary" grid axis and/or set vmem_limit_bytes (v7x has 64 MiB VMEM).
    return pl.pallas_call(
        kernel,
        out_shape=jax.ShapeDtypeStruct((B, d_out_last), x.dtype),
        grid=grid,
        in_specs=in_specs,
        out_specs=pl.BlockSpec((tb, d_out_last), lambda b: (b, 0)),
        scratch_shapes=scratch_shapes,
        compiler_params=pltpu.CompilerParams(
            dimension_semantics=("parallel",)),
    )(*flat_inputs)


def init_fastkan_params(key, layers_hidden, grid_range=(0.0, 1.0), num_grids=5,
                        spline_weight_init_scale=0.1, k1=1, k2=3):
    """Synthetic init matching FastKAN.__init__, plus lane-aligned MXU packing.

    Per-layer feature-slab / w_cat row layout (grid-major, then base):
        [ basis(g=0, i=0..D-1) | ... | basis(g=G_pad-1, i) | silu(i) zero-padded ]
    Padded rows/columns carry zero weights so they contribute nothing.
    """
    params = []
    for in_dim, out_dim in zip(layers_hidden[:-1], layers_hidden[1:]):
        key, k_w, k_b, k_s = jax.random.split(key, 4)
        h = (grid_range[1] - grid_range[0]) / num_grids
        omega = k1 / num_grids
        extra = math.ceil(k2 * omega / h)
        G = num_grids + 2 * extra + 1
        grid = np.linspace(grid_range[0] - extra * h, grid_range[1] + extra * h, G)
        var = omega ** 2
        scale = 1.0 / math.sqrt(2.0 * var)   # RBF scaling folded into operands

        # nn.Linear default init: U(-1/sqrt(in_dim), 1/sqrt(in_dim))
        bound = 1.0 / math.sqrt(in_dim)
        w_base = jax.random.uniform(k_w, (out_dim, in_dim), jnp.float32, -bound, bound)
        b_base = jax.random.uniform(k_b, (out_dim,), jnp.float32, -bound, bound)
        # trunc_normal_(std=spline_weight_init_scale), truncated at +/- 2 std
        w_spline = spline_weight_init_scale * jax.random.truncated_normal(
            k_s, -2.0, 2.0, (out_dim, in_dim, G), jnp.float32)

        # --- lane-block geometry ---
        if in_dim % 128 == 0:
            block_w = in_dim                 # each grid point's chunk already aligned
        elif 128 % in_dim == 0:
            block_w = 128                    # pack 128//in_dim grid points per block
        else:
            # TODO(synk): in_dim not commensurate with 128 -> correct but unaligned path
            block_w = in_dim
        rep = max(1, block_w // in_dim)
        G_pad = _round_up(G, rep)
        basis_w = G_pad * in_dim
        silu_w = _round_up(in_dim, 128)

        # spline rows: row (g*in_dim + i) multiplies basis(x_i, grid_g)
        ws_rows = np.transpose(np.asarray(w_spline), (2, 1, 0)).reshape(G * in_dim, out_dim)
        ws_rows = np.concatenate(
            [ws_rows, np.zeros((basis_w - G * in_dim, out_dim), np.float32)], axis=0)
        # base rows: row (basis_w + i) multiplies silu(x_i); zero rows for lane padding
        wb_rows = np.concatenate(
            [np.asarray(w_base).T, np.zeros((silu_w - in_dim, out_dim), np.float32)], axis=0)
        w_cat = jnp.asarray(np.concatenate([ws_rows, wb_rows], axis=0), jnp.float32)

        # pre-scaled centers: column (g*in_dim + i) holds grid[g]*scale; pad grid pts -> 0
        c_slab = np.zeros((1, basis_w), np.float32)
        c_slab[0, :G * in_dim] = np.repeat(grid * scale, in_dim)

        params.append(dict(
            # raw (PyTorch-layout) params for the reference
            w_base=jnp.asarray(w_base),
            b_base=jnp.asarray(b_base),
            w_spline=jnp.asarray(w_spline),
            grid=grid,
            var=var,
            # fused / lane-aligned kernel layout
            scale=scale,
            block_w=block_w,
            w_cat=w_cat,                                   # (basis_w + silu_w, out)
            b_base2d=jnp.asarray(b_base).reshape(1, out_dim),
            c_slab_scaled=jnp.asarray(c_slab),             # (1, basis_w)
        ))
    return params


def fastkan_reference(x, params):
    """Pure-JAX f32 reference mirroring the PyTorch forward exactly."""
    h = x.astype(jnp.float32)
    for p in params:
        silu = h * jax.nn.sigmoid(h)
        base = silu @ p["w_base"].T + p["b_base"][None, :]
        grid = jnp.asarray(p["grid"], jnp.float32)
        basis = jnp.exp(-(h[..., None] - grid) ** 2 / (2.0 * p["var"]))   # (B, in, G)
        spline = jnp.einsum("big,oig->bo", basis, p["w_spline"])
        h = base + spline
    return h


def fastkan_reference_matched(x, params, mxu_dtype):
    """Reference using the same packed layout + MXU operand dtype as the kernel."""
    h = x.astype(jnp.float32)
    for p in params:
        in_dim = h.shape[1]
        basis_w = p["c_slab_scaled"].shape[1]
        silu_w = p["w_cat"].shape[0] - basis_w
        silu = h * jax.nn.sigmoid(h)
        silu = jnp.pad(silu, ((0, 0), (0, silu_w - in_dim)))
        hs = h * p["scale"]
        x_slab = jnp.tile(hs, (1, basis_w // in_dim))
        basis = jnp.exp(-(x_slab - p["c_slab_scaled"]) ** 2)
        feat = jnp.concatenate([basis, silu], axis=1).astype(mxu_dtype)
        h = jnp.dot(feat, p["w_cat"].astype(mxu_dtype),
                    preferred_element_type=jnp.float32) + p["b_base2d"]
    return h


if __name__ == "__main__":
    key = jax.random.PRNGKey(0)
    layers_hidden = [32, 64, 32]
    batch = 8

    key, k_x, k_p = jax.random.split(key, 3)
    x = jax.random.uniform(k_x, (batch, layers_hidden[0]), jnp.float32, 0.0, 1.0)
    params = init_fastkan_params(k_p, layers_hidden)

    ref = fastkan_reference(x, params)

    # 1) f32 MXU path: bit-tight check against the PyTorch-matching reference.
    out_f32 = jax.block_until_ready(
        fastkan_forward_pallas(x, params, mxu_dtype=jnp.float32))
    assert out_f32.shape == (batch, layers_hidden[-1]), out_f32.shape
    err_f32 = float(jnp.max(jnp.abs(out_f32 - ref)))
    assert jnp.allclose(out_f32, ref, rtol=1e-4, atol=1e-4), err_f32

    # 2) bf16 MXU path (default / fast): tight check against a matched-precision
    #    reference, plus a deliberately loosened check against the f32 reference
    #    (bf16 operand rounding over K=512/896 contractions).
    out_bf16 = jax.block_until_ready(fastkan_forward_pallas(x, params))
    ref_bf16 = fastkan_reference_matched(x, params, jnp.bfloat16)
    err_matched = float(jnp.max(jnp.abs(out_bf16 - ref_bf16)))
    assert jnp.allclose(out_bf16, ref_bf16, rtol=1e-2, atol=1e-2), err_matched
    err_bf16 = float(jnp.max(jnp.abs(out_bf16 - ref)))
    assert jnp.allclose(out_bf16, ref, rtol=5e-2, atol=5e-2), err_bf16

    print("KERNEL_OK")
</pallas_src>

<mosaic_0001>
module attributes {stable_mosaic.version = 11 : i64} {
  func.func @_fastkan_net_kernel(%arg0: i32, %arg1: memref<8x32xf32, #tpu.memory_space<vmem>>, %arg2: memref<1x512xf32, #tpu.memory_space<vmem>>, %arg3: memref<640x64xf32, #tpu.memory_space<vmem>>, %arg4: memref<1x64xf32, #tpu.memory_space<vmem>>, %arg5: memref<1x896xf32, #tpu.memory_space<vmem>>, %arg6: memref<1024x32xf32, #tpu.memory_space<vmem>>, %arg7: memref<1x32xf32, #tpu.memory_space<vmem>>, %arg8: memref<8x32xf32, #tpu.memory_space<vmem>>, %arg9: memref<8x640xf32, #tpu.memory_space<vmem>>, %arg10: memref<8x1024xf32, #tpu.memory_space<vmem>>) attributes {dimension_semantics = [#tpu.dimension_semantics<parallel>], iteration_bounds = array<i64: 1>, scalar_prefetch = 0 : i64, scratch_operands = 2 : i64, tpu.core_type = #tpu.core_type<tc>, window_params = [{transform_indices = @transform_0, window_bounds = array<i64: 8, 32>}, {pipeline_mode = #tpu.pipeline_mode<synchronous>, transform_indices = @transform_1, window_bounds = array<i64: 1, 512>}, {pipeline_mode = #tpu.pipeline_mode<synchronous>, transform_indices = @transform_2, window_bounds = array<i64: 640, 64>}, {pipeline_mode = #tpu.pipeline_mode<synchronous>, transform_indices = @transform_3, window_bounds = array<i64: 1, 64>}, {pipeline_mode = #tpu.pipeline_mode<synchronous>, transform_indices = @transform_4, window_bounds = array<i64: 1, 896>}, {pipeline_mode = #tpu.pipeline_mode<synchronous>, transform_indices = @transform_5, window_bounds = array<i64: 1024, 32>}, {pipeline_mode = #tpu.pipeline_mode<synchronous>, transform_indices = @transform_6, window_bounds = array<i64: 1, 32>}, {transform_indices = @transform_7, window_bounds = array<i64: 8, 32>}]} {
    %c0 = arith.constant 0 : index
    %c0_0 = arith.constant 0 : index
    %0 = vector.load %arg1[%c0, %c0_0] : memref<8x32xf32, #tpu.memory_space<vmem>>, vector<8x32xf32>
    %1 = arith.negf %0 : vector<8x32xf32>
    %2 = math.exp %1 : vector<8x32xf32>
    %cst = arith.constant 1.000000e+00 : f32
    %3 = vector.broadcast %cst : f32 to vector<8x32xf32>
    %4 = arith.addf %3, %2 : vector<8x32xf32>
    %5 = arith.divf %3, %4 : vector<8x32xf32>
    %6 = arith.mulf %0, %5 : vector<8x32xf32>
    %cst_1 = arith.constant 0.000000e+00 : f32
    %7 = vector.broadcast %cst_1 : f32 to vector<8x96xf32>
    %8 = tpu.concatenate %6, %7 in 1 : vector<8x32xf32>, vector<8x96xf32> -> vector<8x128xf32>
    %c0_2 = arith.constant 0 : index
    %c512 = arith.constant 512 : index
    %9 = vector.load %arg9[%c0_2, %c512] : memref<8x640xf32, #tpu.memory_space<vmem>>, vector<8x128xf32>
    tpu.vector_store %arg9[%c0_2, %c512], %8 {strides = array<i32>} : memref<8x640xf32, #tpu.memory_space<vmem>>, vector<8x128xf32>,
    %cst_3 = arith.constant 3.53553391 : f32
    %10 = vector.broadcast %cst_3 : f32 to vector<8x32xf32>
    %11 = arith.mulf %0, %10 : vector<8x32xf32>
    %12 = tpu.concatenate %11, %11, %11, %11 in 1 : vector<8x32xf32>, vector<8x32xf32>, vector<8x32xf32>, vector<8x32xf32> -> vector<8x128xf32>
    %c0_4 = arith.constant 0 : index
    %c0_5 = arith.constant 0 : index
    %13 = vector.load %arg2[%c0_4, %c0_5] : memref<1x512xf32, #tpu.memory_space<vmem>>, vector<1x128xf32>
    %14 = vector.broadcast %13 : vector<1x128xf32> to vector<8x128xf32>
    %15 = arith.subf %12, %14 : vector<8x128xf32>
    %16 = arith.mulf %15, %15 : vector<8x128xf32>
    %cst_6 = arith.constant 0.000000e+00 : f32
    %17 = vector.broadcast %cst_6 : f32 to vector<8x128xf32>
    %18 = arith.subf %17, %16 : vector<8x128xf32>
    %19 = math.exp %18 : vector<8x128xf32>
    %c0_7 = arith.constant 0 : index
    %c0_8 = arith.constant 0 : index
    %20 = vector.load %arg9[%c0_7, %c0_8] : memref<8x640xf32, #tpu.memory_space<vmem>>, vector<8x128xf32>
    tpu.vector_store %arg9[%c0_7, %c0_8], %19 {strides = array<i32>} : memref<8x640xf32, #tpu.memory_space<vmem>>, vector<8x128xf32>,
    %c0_9 = arith.constant 0 : index
    %c128 = arith.constant 128 : index
    %21 = vector.load %arg2[%c0_9, %c128] : memref<1x512xf32, #tpu.memory_space<vmem>>, vector<1x128xf32>
    %22 = vector.broadcast %21 : vector<1x128xf32> to vector<8x128xf32>
    %23 = arith.subf %12, %22 : vector<8x128xf32>
    %24 = arith.mulf %23, %23 : vector<8x128xf32>
    %cst_10 = arith.constant 0.000000e+00 : f32
    %25 = vector.broadcast %cst_10 : f32 to vector<8x128xf32>
    %26 = arith.subf %25, %24 : vector<8x128xf32>
    %27 = math.exp %26 : vector<8x128xf32>
    %c0_11 = arith.constant 0 : index
    %c128_12 = arith.constant 128 : index
    %28 = vector.load %arg9[%c0_11, %c128_12] : memref<8x640xf32, #tpu.memory_space<vmem>>, vector<8x128xf32>
    tpu.vector_store %arg9[%c0_11, %c128_12], %27 {strides = array<i32>} : memref<8x640xf32, #tpu.memory_space<vmem>>, vector<8x128xf32>,
    %c0_13 = arith.constant 0 : index
    %c256 = arith.constant 256 : index
    %29 = vector.load %arg2[%c0_13, %c256] : memref<1x512xf32, #tpu.memory_space<vmem>>, vector<1x128xf32>
    %30 = vector.broadcast %29 : vector<1x128xf32> to vector<8x128xf32>
    %31 = arith.subf %12, %30 : vector<8x128xf32>
    %32 = arith.mulf %31, %31 : vector<8x128xf32>
    %cst_14 = arith.constant 0.000000e+00 : f32
    %33 = vector.broadcast %cst_14 : f32 to vector<8x128xf32>
    %34 = arith.subf %33, %32 : vector<8x128xf32>
    %35 = math.exp %34 : vector<8x128xf32>
    %c0_15 = arith.constant 0 : index
    %c256_16 = arith.constant 256 : index
    %36 = vector.load %arg9[%c0_15, %c256_16] : memref<8x640xf32, #tpu.memory_space<vmem>>, vector<8x128xf32>
    tpu.vector_store %arg9[%c0_15, %c256_16], %35 {strides = array<i32>} : memref<8x640xf32, #tpu.memory_space<vmem>>, vector<8x128xf32>,
    %c0_17 = arith.constant 0 : index
    %c384 = arith.constant 384 : index
    %37 = vector.load %arg2[%c0_17, %c384] : memref<1x512xf32, #tpu.memory_space<vmem>>, vector<1x128xf32>
    %38 = vector.broadcast %37 : vector<1x128xf32> to vector<8x128xf32>
    %39 = arith.subf %12, %38 : vector<8x128xf32>
    %40 = arith.mulf %39, %39 : vector<8x128xf32>
    %cst_18 = arith.constant 0.000000e+00 : f32
    %41 = vector.broadcast %cst_18 : f32 to vector<8x128xf32>
    %42 = arith.subf %41, %40 : vector<8x128xf32>
    %43 = math.exp %42 : vector<8x128xf32>
    %c0_19 = arith.constant 0 : index
    %c384_20 = arith.constant 384 : index
    %44 = vector.load %arg9[%c0_19, %c384_20] : memref<8x640xf32, #tpu.memory_space<vmem>>, vector<8x128xf32>
    tpu.vector_store %arg9[%c0_19, %c384_20], %43 {strides = array<i32>} : memref<8x640xf32, #tpu.memory_space<vmem>>, vector<8x128xf32>,
    %c0_21 = arith.constant 0 : index
    %c0_22 = arith.constant 0 : index
    %45 = vector.load %arg9[%c0_21, %c0_22] : memref<8x640xf32, #tpu.memory_space<vmem>>, vector<8x640xf32>
    %c0_23 = arith.constant 0 : index
    %c0_24 = arith.constant 0 : index
    %46 = vector.load %arg3[%c0_23, %c0_24] : memref<640x64xf32, #tpu.memory_space<vmem>>, vector<640x64xf32>
    %cst_25 = arith.constant dense<0.000000e+00> : vector<8x64xf32>
    %47 = tpu.matmul %45, %46, %cst_25 {dimension_numbers = #tpu.dot_dimension_numbers<[1], [0], [0], [1], [0, 0, 1, 1], [], []>} : vector<8x640xf32>, vector<640x64xf32>, vector<8x64xf32> -> vector<8x64xf32>
    %c0_26 = arith.constant 0 : index
    %c0_27 = arith.constant 0 : index
    %48 = vector.load %arg4[%c0_26, %c0_27] : memref<1x64xf32, #tpu.memory_space<vmem>>, vector<1x64xf32>
    %49 = vector.broadcast %48 : vector<1x64xf32> to vector<8x64xf32>
    %50 = arith.addf %47, %49 : vector<8x64xf32>
    %51 = arith.negf %50 : vector<8x64xf32>
    %52 = math.exp %51 : vector<8x64xf32>
    %cst_28 = arith.constant 1.000000e+00 : f32
    %53 = vector.broadcast %cst_28 : f32 to vector<8x64xf32>
    %54 = arith.addf %53, %52 : vector<8x64xf32>
    %55 = arith.divf %53, %54 : vector<8x64xf32>
    %56 = arith.mulf %50, %55 : vector<8x64xf32>
    %cst_29 = arith.constant 0.000000e+00 : f32
    %57 = vector.broadcast %cst_29 : f32 to vector<8x64xf32>
    %58 = tpu.concatenate %56, %57 in 1 : vector<8x64xf32>, vector<8x64xf32> -> vector<8x128xf32>
    %c0_30 = arith.constant 0 : index
    %c896 = arith.constant 896 : index
    %59 = vector.load %arg10[%c0_30, %c896] : memref<8x1024xf32, #tpu.memory_space<vmem>>, vector<8x128xf32>
    tpu.vector_store %arg10[%c0_30, %c896], %58 {strides = array<i32>} : memref<8x1024xf32, #tpu.memory_space<vmem>>, vector<8x128xf32>,
    %cst_31 = arith.constant 3.53553391 : f32
    %60 = vector.broadcast %cst_31 : f32 to vector<8x64xf32>
    %61 = arith.mulf %50, %60 : vector<8x64xf32>
    %62 = tpu.concatenate %61, %61 in 1 : vector<8x64xf32>, vector<8x64xf32> -> vector<8x128xf32>
    %c0_32 = arith.constant 0 : index
    %c0_33 = arith.constant 0 : index
    %63 = vector.load %arg5[%c0_32, %c0_33] : memref<1x896xf32, #tpu.memory_space<vmem>>, vector<1x128xf32>
    %64 = vector.broadcast %63 : vector<1x128xf32> to vector<8x128xf32>
    %65 = arith.subf %62, %64 : vector<8x128xf32>
    %66 = arith.mulf %65, %65 : vector<8x128xf32>
    %cst_34 = arith.constant 0.000000e+00 : f32
    %67 = vector.broadcast %cst_34 : f32 to vector<8x128xf32>
    %68 = arith.subf %67, %66 : vector<8x128xf32>
    %69 = math.exp %68 : vector<8x128xf32>
    %c0_35 = arith.constant 0 : index
    %c0_36 = arith.constant 0 : index
    %70 = vector.load %arg10[%c0_35, %c0_36] : memref<8x1024xf32, #tpu.memory_space<vmem>>, vector<8x128xf32>
    tpu.vector_store %arg10[%c0_35, %c0_36], %69 {strides = array<i32>} : memref<8x1024xf32, #tpu.memory_space<vmem>>, vector<8x128xf32>,
    %c0_37 = arith.constant 0 : index
    %c128_38 = arith.constant 128 : index
    %71 = vector.load %arg5[%c0_37, %c128_38] : memref<1x896xf32, #tpu.memory_space<vmem>>, vector<1x128xf32>
    %72 = vector.broadcast %71 : vector<1x128xf32> to vector<8x128xf32>
    %73 = arith.subf %62, %72 : vector<8x128xf32>
    %74 = arith.mulf %73, %73 : vector<8x128xf32>
    %cst_39 = arith.constant 0.000000e+00 : f32
    %75 = vector.broadcast %cst_39 : f32 to vector<8x128xf32>
    %76 = arith.subf %75, %74 : vector<8x128xf32>
    %77 = math.exp %76 : vector<8x128xf32>
    %c0_40 = arith.constant 0 : index
    %c128_41 = arith.constant 128 : index
    %78 = vector.load %arg10[%c0_40, %c128_41] : memref<8x1024xf32, #tpu.memory_space<vmem>>, vector<8x128xf32>
    tpu.vector_store %arg10[%c0_40, %c128_41], %77 {strides = array<i32>} : memref<8x1024xf32, #tpu.memory_space<vmem>>, vector<8x128xf32>,
    %c0_42 = arith.constant 0 : index
    %c256_43 = arith.constant 256 : index
    %79 = vector.load %arg5[%c0_42, %c256_43] : memref<1x896xf32, #tpu.memory_space<vmem>>, vector<1x128xf32>
    %80 = vector.broadcast %79 : vector<1x128xf32> to vector<8x128xf32>
    %81 = arith.subf %62, %80 : vector<8x128xf32>
    %82 = arith.mulf %81, %81 : vector<8x128xf32>
    %cst_44 = arith.constant 0.000000e+00 : f32
    %83 = vector.broadcast %cst_44 : f32 to vector<8x128xf32>
    %84 = arith.subf %83, %82 : vector<8x128xf32>
    %85 = math.exp %84 : vector<8x128xf32>
    %c0_45 = arith.constant 0 : index
    %c256_46 = arith.constant 256 : index
    %86 = vector.load %arg10[%c0_45, %c256_46] : memref<8x1024xf32, #tpu.memory_space<vmem>>, vector<8x128xf32>
    tpu.vector_store %arg10[%c0_45, %c256_46], %85 {strides = array<i32>} : memref<8x1024xf32, #tpu.memory_space<vmem>>, vector<8x128xf32>,
    %c0_47 = arith.constant 0 : index
    %c384_48 = arith.constant 384 : index
    %87 = vector.load %arg5[%c0_47, %c384_48] : memref<1x896xf32, #tpu.memory_space<vmem>>, vector<1x128xf32>
    %88 = vector.broadcast %87 : vector<1x128xf32> to vector<8x128xf32>
    %89 = arith.subf %62, %88 : vector<8x128xf32>
    %90 = arith.mulf %89, %89 : vector<8x128xf32>
    %cst_49 = arith.constant 0.000000e+00 : f32
    %91 = vector.broadcast %cst_49 : f32 to vector<8x128xf32>
    %92 = arith.subf %91, %90 : vector<8x128xf32>
    %93 = math.exp %92 : vector<8x128xf32>
    %c0_50 = arith.constant 0 : index
    %c384_51 = arith.constant 384 : index
    %94 = vector.load %arg10[%c0_50, %c384_51] : memref<8x1024xf32, #tpu.memory_space<vmem>>, vector<8x128xf32>
    tpu.vector_store %arg10[%c0_50, %c384_51], %93 {strides = array<i32>} : memref<8x1024xf32, #tpu.memory_space<vmem>>, vector<8x128xf32>,
    %c0_52 = arith.constant 0 : index
    %c512_53 = arith.constant 512 : index
    %95 = vector.load %arg5[%c0_52, %c512_53] : memref<1x896xf32, #tpu.memory_space<vmem>>, vector<1x128xf32>
    %96 = vector.broadcast %95 : vector<1x128xf32> to vector<8x128xf32>
    %97 = arith.subf %62, %96 : vector<8x128xf32>
    %98 = arith.mulf %97, %97 : vector<8x128xf32>
    %cst_54 = arith.constant 0.000000e+00 : f32
    %99 = vector.broadcast %cst_54 : f32 to vector<8x128xf32>
    %100 = arith.subf %99, %98 : vector<8x128xf32>
    %101 = math.exp %100 : vector<8x128xf32>
    %c0_55 = arith.constant 0 : index
    %c512_56 = arith.constant 512 : index
    %102 = vector.load %arg10[%c0_55, %c512_56] : memref<8x1024xf32, #tpu.memory_space<vmem>>, vector<8x128xf32>
    tpu.vector_store %arg10[%c0_55, %c512_56], %101 {strides = array<i32>} : memref<8x1024xf32, #tpu.memory_space<vmem>>, vector<8x128xf32>,
    %c0_57 = arith.constant 0 : index
    %c640 = arith.constant 640 : index
    %103 = vector.load %arg5[%c0_57, %c640] : memref<1x896xf32, #tpu.memory_space<vmem>>, vector<1x128xf32>
    %104 = vector.broadcast %103 : vector<1x128xf32> to vector<8x128xf32>
    %105 = arith.subf %62, %104 : vector<8x128xf32>
    %106 = arith.mulf %105, %105 : vector<8x128xf32>
    %cst_58 = arith.constant 0.000000e+00 : f32
    %107 = vector.broadcast %cst_58 : f32 to vector<8x128xf32>
    %108 = arith.subf %107, %106 : vector<8x128xf32>
    %109 = math.exp %108 : vector<8x128xf32>
    %c0_59 = arith.constant 0 : index
    %c640_60 = arith.constant 640 : index
    %110 = vector.load %arg10[%c0_59, %c640_60] : memref<8x1024xf32, #tpu.memory_space<vmem>>, vector<8x128xf32>
    tpu.vector_store %arg10[%c0_59, %c640_60], %109 {strides = array<i32>} : memref<8x1024xf32, #tpu.memory_space<vmem>>, vector<8x128xf32>,
    %c0_61 = arith.constant 0 : index
    %c768 = arith.constant 768 : index
    %111 = vector.load %arg5[%c0_61, %c768] : memref<1x896xf32, #tpu.memory_space<vmem>>, vector<1x128xf32>
    %112 = vector.broadcast %111 : vector<1x128xf32> to vector<8x128xf32>
    %113 = arith.subf %62, %112 : vector<8x128xf32>
    %114 = arith.mulf %113, %113 : vector<8x128xf32>
    %cst_62 = arith.constant 0.000000e+00 : f32
    %115 = vector.broadcast %cst_62 : f32 to vector<8x128xf32>
    %116 = arith.subf %115, %114 : vector<8x128xf32>
    %117 = math.exp %116 : vector<8x128xf32>
    %c0_63 = arith.constant 0 : index
    %c768_64 = arith.constant 768 : index
    %118 = vector.load %arg10[%c0_63, %c768_64] : memref<8x1024xf32, #tpu.memory_space<vmem>>, vector<8x128xf32>
    tpu.vector_store %arg10[%c0_63, %c768_64], %117 {strides = array<i32>} : memref<8x1024xf32, #tpu.memory_space<vmem>>, vector<8x128xf32>,
    %c0_65 = arith.constant 0 : index
    %c0_66 = arith.constant 0 : index
    %119 = vector.load %arg10[%c0_65, %c0_66] : memref<8x1024xf32, #tpu.memory_space<vmem>>, vector<8x1024xf32>
    %c0_67 = arith.constant 0 : index
    %c0_68 = arith.constant 0 : index
    %120 = vector.load %arg6[%c0_67, %c0_68] : memref<1024x32xf32, #tpu.memory_space<vmem>>, vector<1024x32xf32>
    %cst_69 = arith.constant dense<0.000000e+00> : vector<8x32xf32>
    %121 = tpu.matmul %119, %120, %cst_69 {dimension_numbers = #tpu.dot_dimension_numbers<[1], [0], [0], [1], [0, 0, 1, 1], [], []>} : vector<8x1024xf32>, vector<1024x32xf32>, vector<8x32xf32> -> vector<8x32xf32>
    %c0_70 = arith.constant 0 : index
    %c0_71 = arith.constant 0 : index
    %122 = vector.load %arg7[%c0_70, %c0_71] : memref<1x32xf32, #tpu.memory_space<vmem>>, vector<1x32xf32>
    %123 = vector.broadcast %122 : vector<1x32xf32> to vector<8x32xf32>
    %124 = arith.addf %121, %123 : vector<8x32xf32>
    %c0_72 = arith.constant 0 : index
    %c0_73 = arith.constant 0 : index
    %125 = vector.load %arg8[%c0_72, %c0_73] : memref<8x32xf32, #tpu.memory_space<vmem>>, vector<8x32xf32>
    tpu.vector_store %arg8[%c0_72, %c0_73], %124 {strides = array<i32>} : memref<8x32xf32, #tpu.memory_space<vmem>>, vector<8x32xf32>,
    return
  }
  func.func @transform_0(%arg0: i32) -> (i32, i32) {
    %c0_i32 = arith.constant 0 : i32
    %c0_i32_0 = arith.constant 0 : i32
    return %arg0, %c0_i32 : i32, i32
  }
  func.func @transform_1(%arg0: i32) -> (i32, i32) {
    %c0_i32 = arith.constant 0 : i32
    %c0_i32_0 = arith.constant 0 : i32
    %c0_i32_1 = arith.constant 0 : i32
    return %c0_i32, %c0_i32_0 : i32, i32
  }
  func.func @transform_2(%arg0: i32) -> (i32, i32) {
    %c0_i32 = arith.constant 0 : i32
    %c0_i32_0 = arith.constant 0 : i32
    %c0_i32_1 = arith.constant 0 : i32
    return %c0_i32, %c0_i32_0 : i32, i32
  }
  func.func @transform_3(%arg0: i32) -> (i32, i32) {
    %c0_i32 = arith.constant 0 : i32
    %c0_i32_0 = arith.constant 0 : i32
    %c0_i32_1 = arith.constant 0 : i32
    return %c0_i32, %c0_i32_0 : i32, i32
  }
  func.func @transform_4(%arg0: i32) -> (i32, i32) {
    %c0_i32 = arith.constant 0 : i32
    %c0_i32_0 = arith.constant 0 : i32
    %c0_i32_1 = arith.constant 0 : i32
    return %c0_i32, %c0_i32_0 : i32, i32
  }
  func.func @transform_5(%arg0: i32) -> (i32, i32) {
    %c0_i32 = arith.constant 0 : i32
    %c0_i32_0 = arith.constant 0 : i32
    %c0_i32_1 = arith.constant 0 : i32
    return %c0_i32, %c0_i32_0 : i32, i32
  }
  func.func @transform_6(%arg0: i32) -> (i32, i32) {
    %c0_i32 = arith.constant 0 : i32
    %c0_i32_0 = arith.constant 0 : i32
    %c0_i32_1 = arith.constant 0 : i32
    return %c0_i32, %c0_i32_0 : i32, i32
  }
  func.func @transform_7(%arg0: i32) -> (i32, i32) {
    %c0_i32 = arith.constant 0 : i32
    %c0_i32_0 = arith.constant 0 : i32
    return %arg0, %c0_i32 : i32, i32
  }
}

</mosaic_0001>

<bundles_post_ra>
// kernel: tpu_custom_call.1
= control target key start
LH: loop header
LB: loop body
LE: loop exit
PB: predicated region body
PF: predicated region fallthrough
CT: control target
= control target key end

     0   :  { %s1508_s14 = smov 32   ;;  %s1509_s15 = smov 96   ;;  %s2278_s0 = inlined_call_operand.vmem [shape: f32[8,32], index: 0, kind: input, shape index: {}]   ;;  %s2279_s1 = inlined_call_operand.vmem [shape: f32[1,512], index: 1, kind: input, shape index: {}]   ;;  %s2280_s2 = inlined_call_operand.vmem [shape: f32[640,64], index: 2, kind: input, shape index: {}]   ;;  %s2281_s3 = inlined_call_operand.vmem [shape: f32[1,64], index: 3, kind: input, shape index: {}]   ;;  %s2282_s4 = inlined_call_operand.vmem [shape: f32[1,896], index: 4, kind: input, shape index: {}]   ;;  %s2283_s5 = inlined_call_operand.vmem [shape: f32[1024,32], index: 5, kind: input, shape index: {}]   ;;  %s2284_s6 = inlined_call_operand.vmem [shape: f32[1,32], index: 6, kind: input, shape index: {}]   ;;  %s2285_s7 = inlined_call_operand.hbm [shape: f32[8,32], index: 7, kind: output, shape index: {}]  }
   0x1   :  { %v1558_v0 = vld [vmem:[%s2278_s0] sm:$0xff]  ;;  %v128_v2 = vld [vmem:[%s2280_s2 + $0x88] sm:$0xff]  ;;  %v129_v14 = vld [vmem:[%s2280_s2 + $0x90] sm:$0xff] }
   0x2   :  { %v127_v1 = vld [vmem:[%s2280_s2 + $0x80] sm:$0xff]  ;;  %v1567_v3 = vmul.f32 3.535534, %v1558_v0  ;;  %v112_v6 = vld [vmem:[%s2280_s2 + $0x8] sm:$0xff]  ;;  %v130_v15 = vld [vmem:[%s2280_s2 + $0x98] sm:$0xff] }
   0x3   :  { %v1231_v4 = vpack.c.bf16 %v128_v2, %v127_v1  ;;  %v111_v5 = vld [vmem:[%s2280_s2] sm:$0xff]  ;;  %v160_v8 = vld [vmem:[%s2280_s2 + $0x188] sm:$0xff]  ;;  %v113_v16 = vld [vmem:[%s2280_s2 + $0x10] sm:$0xff]  ;;  %v1235_v17 = vpack.c.bf16 %v130_v15, %v129_v14 }
   0x4   :  { %v159_v7 = vld [vmem:[%s2280_s2 + $0x180] sm:$0xff]  ;;  %40 = vrot.lane.b32.xlu0 %v1567_v3, %s1508_s14  ;;  %46 = vrot.lane.b32.xlu1 %v1567_v3, %s1509_s15  ;;  %v1233_v9 = vpack.c.bf16 %v112_v6, %v111_v5  ;;  %v144_v12 = vld [vmem:[%s2280_s2 + $0x108] sm:$0xff]  ;;  %s1510_s14 = smov 64  }
   0x5   :  { %v1263_v10 = vpack.c.bf16 %v160_v8, %v159_v7  ;;  %v143_v11 = vld [vmem:[%s2280_s2 + $0x100] sm:$0xff]  ;;  %1232 = vmatprep.subr.bf16.mxu0 %v1231_v4  ;;  %v114_v18 = vld [vmem:[%s2280_s2 + $0x18] sm:$0xff]  ;;  %v161_v19 = vld [vmem:[%s2280_s2 + $0x190] sm:$0xff] }
   0x6   :  { %v1265_v13 = vpack.c.bf16 %v144_v12, %v143_v11  ;;  %1234 = vmatpush3.bf16.msra.mxu0 %v1233_v9  ;;  %v162_v20 = vld [vmem:[%s2280_s2 + $0x198] sm:$0xff]  ;;  %v1237_v21 = vpack.c.bf16 %v114_v18, %v113_v16  ;;  %v145_v23 = vld [vmem:[%s2280_s2 + $0x110] sm:$0xff]  ;;  %v131_v25 = vld [vmem:[%s2280_s2 + $0xa0] sm:$0xff] }
   0x7   :  { %1264 = vmatprep.subr.bf16.mxu1 %v1263_v10  ;;  %v1267_v22 = vpack.c.bf16 %v162_v20, %v161_v19  ;;  %v146_v24 = vld [vmem:[%s2280_s2 + $0x118] sm:$0xff]  ;;  %1236 = vmatprep.subr.bf16.mxu0 %v1235_v17  ;;  %v132_v27 = vld [vmem:[%s2280_s2 + $0xa8] sm:$0xff]  ;;  %v115_v28 = vld [vmem:[%s2280_s2 + $0x20] sm:$0xff] }
   0x8   :  { %1266 = vmatpush3.bf16.msra.mxu1 %v1265_v13  ;;  %43 = vrot.lane.b32.xlu0 %v1567_v3, %s1510_s14  ;;  %v1269_v26 = vpack.c.bf16 %v146_v24, %v145_v23  ;;  %v116_v29 = vld [vmem:[%s2280_s2 + $0x28] sm:$0xff]  ;;  %v1239_v30 = vpack.c.bf16 %v132_v27, %v131_v25  ;;  %v163_v31 = vld [vmem:[%s2280_s2 + $0x1a0] sm:$0xff]  ;;  %v133_v38 = vld [vmem:[%s2280_s2 + $0xb0] sm:$0xff] }
   0x9   :  { %1268 = vmatprep.subr.bf16.mxu1 %v1267_v22  ;;  %v164_v32 = vld [vmem:[%s2280_s2 + $0x1a8] sm:$0xff]  ;;  %v147_v33 = vld [vmem:[%s2280_s2 + $0x120] sm:$0xff]  ;;  %v1241_v34 = vpack.c.bf16 %v116_v29, %v115_v28  ;;  %v134_v39 = vld [vmem:[%s2280_s2 + $0xb8] sm:$0xff] }
   0xa   :  { %1238 = vmatpush3.bf16.msra.mxu0 %v1237_v21  ;;  %v1271_v35 = vpack.c.bf16 %v164_v32, %v163_v31  ;;  %v148_v36 = vld [vmem:[%s2280_s2 + $0x128] sm:$0xff]  ;;  %v117_v40 = vld [vmem:[%s2280_s2 + $0x30] sm:$0xff]  ;;  %v1243_v41 = vpack.c.bf16 %v134_v39, %v133_v38  ;;  %v118_v42 = vld [vmem:[%s2280_s2 + $0x38] sm:$0xff] }
   0xb   :  { %1240 = vmatprep.subr.bf16.mxu0 %v1239_v30  ;;  %v1273_v37 = vpack.c.bf16 %v148_v36, %v147_v33  ;;  %v165_v43 = vld [vmem:[%s2280_s2 + $0x1b0] sm:$0xff]  ;;  %v166_v44 = vld [vmem:[%s2280_s2 + $0x1b8] sm:$0xff]  ;;  %v135_v48 = vld [vmem:[%s2280_s2 + $0xc0] sm:$0xff]  ;;  %v1245_v49 = vpack.c.bf16 %v118_v42, %v117_v40 }
   0xc   :  { %1270 = vmatpush3.bf16.msra.mxu1 %v1269_v26  ;;  %v1275_v45 = vpack.c.bf16 %v166_v44, %v165_v43  ;;  %v149_v46 = vld [vmem:[%s2280_s2 + $0x130] sm:$0xff]  ;;  %v150_v47 = vld [vmem:[%s2280_s2 + $0x138] sm:$0xff]  ;;  %v136_v50 = vld [vmem:[%s2280_s2 + $0xc8] sm:$0xff] }
   0xd   :  { %1272 = vmatprep.subr.bf16.mxu1 %v1271_v35  ;;  %v119_v51 = vld [vmem:[%s2280_s2 + $0x40] sm:$0xff]  ;;  %v120_v52 = vld [vmem:[%s2280_s2 + $0x48] sm:$0xff]  ;;  %v1277_v53 = vpack.c.bf16 %v150_v47, %v149_v46  ;;  %v1247_v54 = vpack.c.bf16 %v136_v50, %v135_v48  ;;  %v137_v60 = vld [vmem:[%s2280_s2 + $0xd0] sm:$0xff] }
   0xe   :  { %1242 = vmatpush3.bf16.msra.mxu0 %v1241_v34  ;;  %v167_v55 = vld [vmem:[%s2280_s2 + $0x1c0] sm:$0xff]  ;;  %v168_v56 = vld [vmem:[%s2280_s2 + $0x1c8] sm:$0xff]  ;;  %v138_v61 = vld [vmem:[%s2280_s2 + $0xd8] sm:$0xff]  ;;  %v1249_v63 = vpack.c.bf16 %v120_v52, %v119_v51 }
   0xf   :  { %1244 = vmatprep.subr.bf16.mxu0 %v1243_v41  ;;  %v151_v57 = vld [vmem:[%s2280_s2 + $0x140] sm:$0xff]  ;;  %v1279_v58 = vpack.c.bf16 %v168_v56, %v167_v55  ;;  %v152_v59 = vld [vmem:[%s2280_s2 + $0x148] sm:$0xff]  ;;  %v169_v62 = vld [vmem:[%s2280_s2 + $0x1d0] sm:$0xff]  ;;  %v1251_v4 = vpack.c.bf16 %v138_v61, %v137_v60 }
  0x10   :  { %1274 = vmatpush3.bf16.msra.mxu1 %v1273_v37  ;;  %v170_v1 = vld [vmem:[%s2280_s2 + $0x1d8] sm:$0xff]  ;;  %v1281_v2 = vpack.c.bf16 %v152_v59, %v151_v57  ;;  %v121_v5 = vld [vmem:[%s2280_s2 + $0x50] sm:$0xff]  ;;  %v139_v10 = vld [vmem:[%s2280_s2 + $0xe0] sm:$0xff] }
  0x11   :  { %1276 = vmatprep.subr.bf16.mxu1 %v1275_v45  ;;  %v122_v6 = vld [vmem:[%s2280_s2 + $0x58] sm:$0xff]  ;;  %v153_v7 = vld [vmem:[%s2280_s2 + $0x150] sm:$0xff]  ;;  %v1283_v8 = vpack.c.bf16 %v170_v1, %v169_v62  ;;  %v140_v11 = vld [vmem:[%s2280_s2 + $0xe8] sm:$0xff] }
  0x12   :  { %1246 = vmatpush3.bf16.msra.mxu0 %v1245_v49  ;;  %v154_v9 = vld [vmem:[%s2280_s2 + $0x158] sm:$0xff]  ;;  %v171_v12 = vld [vmem:[%s2280_s2 + $0x1e0] sm:$0xff]  ;;  %v172_v13 = vld [vmem:[%s2280_s2 + $0x1e8] sm:$0xff]  ;;  %v1253_v14 = vpack.c.bf16 %v122_v6, %v121_v5  ;;  %v1255_v16 = vpack.c.bf16 %v140_v11, %v139_v10 }
  0x13   :  { %1248 = vmatprep.subr.bf16.mxu0 %v1247_v54  ;;  %v1285_v15 = vpack.c.bf16 %v154_v9, %v153_v7  ;;  %v123_v17 = vld [vmem:[%s2280_s2 + $0x60] sm:$0xff]  ;;  %v124_v18 = vld [vmem:[%s2280_s2 + $0x68] sm:$0xff]  ;;  %v1287_v20 = vpack.c.bf16 %v172_v13, %v171_v12  ;;  %v141_v22 = vld [vmem:[%s2280_s2 + $0xf0] sm:$0xff] }
  0x14   :  { %1278 = vmatpush3.bf16.msra.mxu1 %v1277_v53  ;;  %v155_v19 = vld [vmem:[%s2280_s2 + $0x160] sm:$0xff]  ;;  %v156_v21 = vld [vmem:[%s2280_s2 + $0x168] sm:$0xff]  ;;  %v142_v23 = vld [vmem:[%s2280_s2 + $0xf8] sm:$0xff]  ;;  %v1257_v26 = vpack.c.bf16 %v124_v18, %v123_v17 }
  0x15   :  { %1280 = vmatprep.subr.bf16.mxu1 %v1279_v58  ;;  %v173_v24 = vld [vmem:[%s2280_s2 + $0x1f0] sm:$0xff]  ;;  %v174_v25 = vld [vmem:[%s2280_s2 + $0x1f8] sm:$0xff]  ;;  %v1289_v27 = vpack.c.bf16 %v156_v21, %v155_v19  ;;  %v1259_v28 = vpack.c.bf16 %v142_v23, %v141_v22 }
  0x16   :  { %1250 = vmatpush3.bf16.msra.mxu0 %v1249_v63  ;;  %v125_v29 = vld [vmem:[%s2280_s2 + $0x70] sm:$0xff]  ;;  %v126_v30 = vld [vmem:[%s2280_s2 + $0x78] sm:$0xff] }
  0x17   :  { %1252 = vmatprep.subr.bf16.mxu0 %v1251_v4 }
  0x18   :  { %1282 = vmatpush3.bf16.msra.mxu1 %v1281_v2 }
  0x19   :  { %1284 = vmatprep.subr.bf16.mxu1 %v1283_v8 }
  0x1a   :  { %1254 = vmatpush3.bf16.msra.mxu0 %v1253_v14 }
  0x1b   :  { %1256 = vmatprep.subr.bf16.mxu0 %v1255_v16 }
  0x1c   :  { %1286 = vmatpush3.bf16.msra.mxu1 %v1285_v15 }
  0x1d   :  { %12 = vsyncpa [#allocation5], 0  ;;  %1288 = vmatprep.subr.bf16.mxu1 %v1287_v20  ;;  %v1291_v31 = vpack.c.bf16 %v174_v25, %v173_v24  ;;  %v157_v32 = vld [vmem:[%s2280_s2 + $0x170] sm:$0xff]  ;;  %v158_v33 = vld [vmem:[%s2280_s2 + $0x178] sm:$0xff]  ;;  %v1261_v34 = vpack.c.bf16 %v126_v30, %v125_v29  ;;  %v1511_v36 = vmov 0.0|0.0   ;;  %vm35_vm0 = vcmask 261120  }
  0x1e   :  { %1258 = vmatpush3.bf16.msra.mxu0 %v1257_v26  ;;  %v1293_v35 = vpack.c.bf16 %v158_v33, %v157_v32  ;;  %vm50_vm1 = vcmask 523264   ;;  %vm52_vm2 = vcmask 785408   ;;  %v953_v38 = vld [vmem:[%s2279_s1] ss:$0 sm:$0xff]  ;;  %v955_v42 = vld [vmem:[%s2279_s1 + $0x2] ss:$0 sm:$0xff] }
  0x1f   :  { %1260 = vmatprep.subr.bf16.mxu0 %v1259_v28  ;;  %v954_v43 = vld [vmem:[%s2279_s1 + $0x1] ss:$0 sm:$0xff]  ;;  %v956_v44 = vld [vmem:[%s2279_s1 + $0x3] ss:$0 sm:$0xff]  ;;  %v952_v62 = vmul.f32 -1.442695, %v1558_v0 }
  0x20   :  { %1290 = vmatpush3.bf16.msra.mxu1 %v1289_v27  ;;  %v175_v63 = vld [vmem:[%s2280_s2 + $0x200] sm:$0xff]  ;;  %v176_v1 = vld [vmem:[%s2280_s2 + $0x208] sm:$0xff]  ;;  %v177_v7 = vld [vmem:[%s2280_s2 + $0x210] sm:$0xff]  ;;  %vm1512_vm3 = vmmov 0   ;;  %v1513_v13 = vmov 0.0  }
  0x21   :  { %1292 = vmatprep.subr.bf16.mxu1 %v1291_v31  ;;  %v1296_v5 = vpack.c.bf16 %v176_v1, %v175_v63  ;;  %v178_v8 = vld [vmem:[%s2280_s2 + $0x218] sm:$0xff]  ;;  %v179_v11 = vld [vmem:[%s2280_s2 + $0x220] sm:$0xff]  ;;  %v180_v12 = vld [vmem:[%s2280_s2 + $0x228] sm:$0xff] }
  0x22   :  { %1262 = vmatpush3.bf16.msra.mxu0 %v1261_v34  ;;  %v1299_v10 = vpack.c.bf16 %v178_v8, %v177_v7  ;;  %v1302_v14 = vpack.c.bf16 %v180_v12, %v179_v11  ;;  %v181_v15 = vld [vmem:[%s2280_s2 + $0x230] sm:$0xff]  ;;  %v182_v16 = vld [vmem:[%s2280_s2 + $0x238] sm:$0xff]  ;;  %v183_v19 = vld [vmem:[%s2280_s2 + $0x240] sm:$0xff] }
  0x23   :  { %1295 = vmatprep.subr.bf16.mxu0 %v1511_v36  ;;  %v1305_v18 = vpack.c.bf16 %v182_v16, %v181_v15  ;;  %v184_v20 = vld [vmem:[%s2280_s2 + $0x248] sm:$0xff]  ;;  %v185_v23 = vld [vmem:[%s2280_s2 + $0x250] sm:$0xff]  ;;  %v186_v24 = vld [vmem:[%s2280_s2 + $0x258] sm:$0xff] }
  0x24   :  { %1294 = vmatpush3.bf16.msra.mxu1 %v1293_v35  ;;  %v1308_v22 = vpack.c.bf16 %v184_v20, %v183_v19  ;;  %v1311_v25 = vpack.c.bf16 %v186_v24, %v185_v23  ;;  %v187_v26 = vld [vmem:[%s2280_s2 + $0x260] sm:$0xff]  ;;  %v188_v27 = vld [vmem:[%s2280_s2 + $0x268] sm:$0xff]  ;;  %v189_v29 = vld [vmem:[%s2280_s2 + $0x270] sm:$0xff] }
  0x25   :  { %v1314_v28 = vpack.c.bf16 %v188_v27, %v187_v26  ;;  %v190_v30 = vld [vmem:[%s2280_s2 + $0x278] sm:$0xff]  ;;  %v538_v34 = vld [vmem:[%s2283_s5 + $0x80] sm:$0xff]  ;;  %v539_v35 = vld [vmem:[%s2283_s5 + $0x88] sm:$0xff] }
  0x26   :  { %v1317_v32 = vpack.c.bf16 %v190_v30, %v189_v29  ;;  %v527_v63 = vld [vmem:[%s2283_s5 + $0x28] sm:$0xff]  ;;  %v558_v1 = vld [vmem:[%s2283_s5 + $0x120] sm:$0xff]  ;;  %v544_v15 = vld [vmem:[%s2283_s5 + $0xb0] sm:$0xff] }
  0x27   :  { %v957_v8 = vld [vmem:[%s2281_s3] ss:$0 sm:$0xff]  ;;  %v545_v16 = vld [vmem:[%s2283_s5 + $0xb8] sm:$0xff]  ;;  %v528_v20 = vld [vmem:[%s2283_s5 + $0x30] sm:$0xff] }
  0x28   :  { %v577_v19 = vld [vmem:[%s2283_s5 + $0x1b8] sm:$0xff]  ;;  %v560_v24 = vld [vmem:[%s2283_s5 + $0x130] sm:$0xff]  ;;  %v546_v27 = vld [vmem:[%s2283_s5 + $0xc0] sm:$0xff] }
  0x29   :  { %v578_v29 = vld [vmem:[%s2283_s5 + $0x1c0] sm:$0xff] }
  0x76   :  { %v41_v37 = vpop.permute.xlu0 %40  ;;  %v47_v39 = vpop.permute.xlu1 %46 }
  0x77   :  { %v49_v40 = vsel %vm35_vm0, %v1567_v3, %v41_v37  ;;  %v570_v37 = vld [vmem:[%s2283_s5 + $0x180] sm:$0xff] }
  0x7a   :  { %v44_v41 = vpop.permute.xlu0 %43 }
  0x7b   :  { %v51_v45 = vsel %vm50_vm1, %v49_v40, %v44_v41 }
  0x7c   :  { %v53_v46 = vsel %vm52_vm2, %v51_v45, %v47_v39  ;;  %v523_v39 = vld [vmem:[%s2283_s5 + $0x8] sm:$0xff] }
  0x7d   :  { %v61_v47 = vsub.f32 %v53_v46, %v953_v38  ;;  %v87_v48 = vsub.f32 %v53_v46, %v955_v42  ;;  %v74_v49 = vsub.f32 %v53_v46, %v954_v43  ;;  %v100_v3 = vsub.f32 %v53_v46, %v956_v44  ;;  %v554_v42 = vld [vmem:[%s2283_s5 + $0x100] sm:$0xff]  ;;  %v555_v43 = vld [vmem:[%s2283_s5 + $0x108] sm:$0xff]  ;;  %v540_v44 = vld [vmem:[%s2283_s5 + $0x90] sm:$0xff] }
  0x7e   :  { %v1319_v38 = vpack.c.bf16 %v539_v35, %v538_v34  ;;  %v1353_v45 = vpack.c.bf16 %v555_v43, %v554_v42  ;;  %v541_v46 = vld [vmem:[%s2283_s5 + $0x98] sm:$0xff]  ;;  %v531_v34 = vld [vmem:[%s2283_s5 + $0x48] sm:$0xff]  ;;  %v548_v42 = vld [vmem:[%s2283_s5 + $0xd0] sm:$0xff] }
  0x7f   :  { %v62_v50 = vmul.f32 %v61_v47, %v61_v47  ;;  %v88_v51 = vmul.f32 %v87_v48, %v87_v48  ;;  %v75_v52 = vmul.f32 %v74_v49, %v74_v49  ;;  %v101_v53 = vmul.f32 %v100_v3, %v100_v3  ;;  %v572_v47 = vld [vmem:[%s2283_s5 + $0x190] sm:$0xff]  ;;  %v573_v48 = vld [vmem:[%s2283_s5 + $0x198] sm:$0xff] }
  0x80   :  { %1320 = vmatprep.subr.bf16.mxu1 %v1319_v38  ;;  %v1323_v49 = vpack.c.bf16 %v541_v46, %v540_v44  ;;  %v1355_v3 = vpack.c.bf16 %v573_v48, %v572_v47  ;;  %v549_v43 = vld [vmem:[%s2283_s5 + $0xd8] sm:$0xff]  ;;  %v532_v47 = vld [vmem:[%s2283_s5 + $0x50] sm:$0xff] }
  0x81   :  { %v63_v54 = vsub.f32 0.0, %v62_v50  ;;  %v89_v55 = vsub.f32 0.0, %v88_v51  ;;  %v76_v56 = vsub.f32 0.0, %v75_v52  ;;  %v102_v57 = vsub.f32 0.0, %v101_v53  ;;  %v524_v50 = vld [vmem:[%s2283_s5 + $0x10] sm:$0xff]  ;;  %v525_v51 = vld [vmem:[%s2283_s5 + $0x18] sm:$0xff] }
  0x82   :  { %v556_v52 = vld [vmem:[%s2283_s5 + $0x110] sm:$0xff]  ;;  %v1325_v53 = vpack.c.bf16 %v525_v51, %v524_v50  ;;  %v1339_v44 = vpack.c.bf16 %v549_v43, %v548_v42  ;;  %v581_v46 = vld [vmem:[%s2283_s5 + $0x1d8] sm:$0xff] }
  0x83   :  { %v64_v58 = vmul.f32 1.442695, %v63_v54  ;;  %v90_v59 = vmul.f32 1.442695, %v89_v55  ;;  %v77_v60 = vmul.f32 1.442695, %v76_v56 }
  0x84   :  { %v103_v61 = vmul.f32 1.442695, %v102_v57  ;;  %v557_v54 = vld [vmem:[%s2283_s5 + $0x118] sm:$0xff]  ;;  %v542_v55 = vld [vmem:[%s2283_s5 + $0xa0] sm:$0xff]  ;;  %v543_v56 = vld [vmem:[%s2283_s5 + $0xa8] sm:$0xff] }
  0x85   :  { %1454 = vpow2.f32 %v64_v58  ;;  %v1357_v57 = vpack.c.bf16 %v557_v54, %v556_v52  ;;  %v1327_v58 = vpack.c.bf16 %v543_v56, %v542_v55  ;;  %v565_v50 = vld [vmem:[%s2283_s5 + $0x158] sm:$0xff]  ;;  %v551_v54 = vld [vmem:[%s2283_s5 + $0xe8] sm:$0xff]  ;;  %v582_v55 = vld [vmem:[%s2283_s5 + $0x1e0] sm:$0xff] }
  0x86   :  { %1456 = vpow2.f32 %v90_v59  ;;  %v574_v59 = vld [vmem:[%s2283_s5 + $0x1a0] sm:$0xff] }
  0x87   :  { %1458 = vpow2.f32 %v77_v60  ;;  %v575_v60 = vld [vmem:[%s2283_s5 + $0x1a8] sm:$0xff] }
  0x88   :  { %1460 = vpow2.f32 %v103_v61  ;;  %v526_v61 = vld [vmem:[%s2283_s5 + $0x20] sm:$0xff] }
  0x89   :  { %1462 = vpow2.f32 %v952_v62  ;;  %v1359_v62 = vpack.c.bf16 %v575_v60, %v574_v59  ;;  %v535_v59 = vld [vmem:[%s2283_s5 + $0x68] sm:$0xff] }
  0x8f   :  { %v1455_v2 = vpop.eup %1454 }
  0x90   :  { %v1457_v4 = vpop.eup %1456 }
  0x91   :  { %v1459_v6 = vpop.eup %1458 }
  0x92   :  { %v1461_v9 = vpop.eup %1460  ;;  %262 = vmatprep.mubr.f32.mxu0 %v1459_v6 }
  0x93   :  { %332 = vmatprep.mubr.f32.mxu1 %v1461_v9  ;;  %263 = vmatmul.mubr.f32.vlgmr.msra.gmra.mrb[0].mxu0 %v1455_v2  ;;  %v1463_v17 = vpop.eup %1462  ;;  %v559_v2 = vld [vmem:[%s2283_s5 + $0x128] sm:$0xff] }
  0x94   :  { %333 = vmatmul.mubr.f32.vlgmr.msra.gmra.mrb[0].mxu1 %v1457_v4  ;;  %1297 = vmatpush3.bf16.msra.mxu0 %v1296_v5  ;;  %v31_v21 = vadd.f32 1.0, %v1463_v17  ;;  %v1329_v4 = vpack.c.bf16 %v527_v63, %v526_v61  ;;  %v1361_v5 = vpack.c.bf16 %v559_v2, %v558_v1  ;;  %v576_v17 = vld [vmem:[%s2283_s5 + $0x1b0] sm:$0xff]  ;;  %v567_v63 = vld [vmem:[%s2283_s5 + $0x168] sm:$0xff] }
  0x95   :  { %1298 = vmatprep.subr.bf16.mxu0 %v1511_v36  ;;  %1228 = vmatprep.mubr.msk.f32.mxu0 %vm1512_vm3, %v1513_v13  ;;  %v552_v1 = vld [vmem:[%s2283_s5 + $0xf0] sm:$0xff] }
  0x96   :  { %1464 = vrcp.f32 %v31_v21  ;;  %v529_v21 = vld [vmem:[%s2283_s5 + $0x38] sm:$0xff] }
  0x97   :  { %v1333_v23 = vpack.c.bf16 %v529_v21, %v528_v20 }
  0x98   :  { %1300 = vmatpush3.bf16.msra.mxu0 %v1299_v10 }
  0x99   :  { %1301 = vmatprep.subr.bf16.mxu0 %v1511_v36 }
  0x9c   :  { %1303 = vmatpush3.bf16.msra.mxu0 %v1302_v14 }
  0x9d   :  { %1304 = vmatprep.subr.bf16.mxu0 %v1511_v36 }
  0xa0   :  { %1306 = vmatpush3.bf16.msra.mxu0 %v1305_v18  ;;  %v1465_v31 = vpop.eup %1464  ;;  %v1331_v18 = vpack.c.bf16 %v545_v16, %v544_v15  ;;  %v602_v15 = vld [vmem:[%s2283_s5 + $0x280] sm:$0xff]  ;;  %v603_v16 = vld [vmem:[%s2283_s5 + $0x288] sm:$0xff] }
  0xa1   :  { %1307 = vmatprep.subr.bf16.mxu0 %v1511_v36  ;;  %v34_v33 = vmul.f32 %v1465_v31, %v1558_v0  ;;  %v571_v0 = vld [vmem:[%s2283_s5 + $0x188] sm:$0xff] }
  0xa2   :  { %v1351_v40 = vpack.c.bf16 %v571_v0, %v570_v37 }
  0xa4   :  { %1309 = vmatpush3.bf16.msra.mxu0 %v1308_v22  ;;  %v1363_v22 = vpack.c.bf16 %v577_v19, %v576_v17  ;;  %v634_v17 = vld [vmem:[%s2283_s5 + $0x380] sm:$0xff]  ;;  %v635_v19 = vld [vmem:[%s2283_s5 + $0x388] sm:$0xff] }
  0xa5   :  { %1310 = vmatprep.subr.bf16.mxu0 %v1511_v36  ;;  %v1415_v20 = vpack.c.bf16 %v635_v19, %v634_v17  ;;  %v591_v19 = vld [vmem:[%s2283_s5 + $0x228] sm:$0xff] }
  0xa8   :  { %1312 = vmatpush3.bf16.msra.mxu0 %v1311_v25  ;;  %v561_v25 = vld [vmem:[%s2283_s5 + $0x138] sm:$0xff] }
  0xa9   :  { %1313 = vmatprep.subr.bf16.mxu0 %v1511_v36  ;;  %v1365_v26 = vpack.c.bf16 %v561_v25, %v560_v24  ;;  %v961_v24 = vld [vmem:[%s2282_s4 + $0x2] ss:$0 sm:$0xff]  ;;  %v962_v25 = vld [vmem:[%s2282_s4 + $0x3] ss:$0 sm:$0xff] }
  0xac   :  { %1315 = vmatpush3.bf16.msra.mxu0 %v1314_v28  ;;  %v547_v28 = vld [vmem:[%s2283_s5 + $0xc8] sm:$0xff] }
  0xad   :  { %1316 = vmatprep.subr.bf16.mxu0 %v1511_v36  ;;  %v522_v36 = vld [vmem:[%s2283_s5] sm:$0xff]  ;;  %v1335_v31 = vpack.c.bf16 %v547_v28, %v546_v27 }
  0xae   :  { %v1321_v41 = vpack.c.bf16 %v523_v39, %v522_v36  ;;  %v562_v36 = vld [vmem:[%s2283_s5 + $0x140] sm:$0xff]  ;;  %v563_v39 = vld [vmem:[%s2283_s5 + $0x148] sm:$0xff] }
  0xb0   :  { %1318 = vmatpush3.bf16.msra.mxu0 %v1317_v32  ;;  %1322 = vmatpush3.bf16.msra.mxu1 %v1321_v41  ;;  %v579_v32 = vld [vmem:[%s2283_s5 + $0x1c8] sm:$0xff] }
  0xb1   :  { %1352 = vmatprep.subr.bf16.mxu0 %v1351_v40  ;;  %1324 = vmatprep.subr.bf16.mxu1 %v1323_v49  ;;  %v1367_v38 = vpack.c.bf16 %v579_v32, %v578_v29  ;;  %v1369_v40 = vpack.c.bf16 %v563_v39, %v562_v36  ;;  %v533_v49 = vld [vmem:[%s2283_s5 + $0x58] sm:$0xff] }
  0xb2   :  { %v1341_v51 = vpack.c.bf16 %v533_v49, %v532_v47 }
  0xb3   :  { %1229 = vmatmul.mubr.msk.f32.vlgmr.msra.gmra.mrb[2].mxu0 %vm35_vm0, %v34_v33  ;;  %v530_v33 = vld [vmem:[%s2283_s5 + $0x40] sm:$0xff] }
  0xb4   :  { %1354 = vmatpush3.bf16.msra.mxu0 %v1353_v45  ;;  %1326 = vmatpush3.bf16.msra.mxu1 %v1325_v53  ;;  %v1337_v0 = vpack.c.bf16 %v531_v34, %v530_v33  ;;  %v580_v45 = vld [vmem:[%s2283_s5 + $0x1d0] sm:$0xff]  ;;  %v550_v53 = vld [vmem:[%s2283_s5 + $0xe0] sm:$0xff] }
  0xb5   :  { %1356 = vmatprep.subr.bf16.mxu0 %v1355_v3  ;;  %1328 = vmatprep.subr.bf16.mxu1 %v1327_v58  ;;  %v1371_v48 = vpack.c.bf16 %v581_v46, %v580_v45  ;;  %v564_v3 = vld [vmem:[%s2283_s5 + $0x150] sm:$0xff]  ;;  %v1343_v56 = vpack.c.bf16 %v551_v54, %v550_v53  ;;  %v534_v58 = vld [vmem:[%s2283_s5 + $0x60] sm:$0xff]  ;;  %v605_v53 = vld [vmem:[%s2283_s5 + $0x298] sm:$0xff] }
  0xb6   :  { %v1373_v52 = vpack.c.bf16 %v565_v50, %v564_v3  ;;  %v1345_v61 = vpack.c.bf16 %v535_v59, %v534_v58  ;;  %v586_v50 = vld [vmem:[%s2283_s5 + $0x200] sm:$0xff]  ;;  %v636_v59 = vld [vmem:[%s2283_s5 + $0x390] sm:$0xff] }
  0xb8   :  { %1358 = vmatpush3.bf16.msra.mxu0 %v1357_v57  ;;  %1330 = vmatpush3.bf16.msra.mxu1 %v1329_v4  ;;  %v583_v57 = vld [vmem:[%s2283_s5 + $0x1e8] sm:$0xff]  ;;  %v553_v4 = vld [vmem:[%s2283_s5 + $0xf8] sm:$0xff] }
  0xb9   :  { %1360 = vmatprep.subr.bf16.mxu0 %v1359_v62  ;;  %1332 = vmatprep.subr.bf16.mxu1 %v1331_v18  ;;  %v1375_v60 = vpack.c.bf16 %v583_v57, %v582_v55  ;;  %v566_v62 = vld [vmem:[%s2283_s5 + $0x160] sm:$0xff]  ;;  %v1383_v18 = vpack.c.bf16 %v603_v16, %v602_v15 }
  0xba   :  { %v1377_v2 = vpack.c.bf16 %v567_v63, %v566_v62  ;;  %v618_v55 = vld [vmem:[%s2283_s5 + $0x300] sm:$0xff]  ;;  %v588_v63 = vld [vmem:[%s2283_s5 + $0x210] sm:$0xff] }
  0xbb   :  { %v963_v16 = vld [vmem:[%s2282_s4 + $0x4] ss:$0 sm:$0xff] }
  0xbc   :  { %1362 = vmatpush3.bf16.msra.mxu0 %v1361_v5  ;;  %1334 = vmatpush3.bf16.msra.mxu1 %v1333_v23  ;;  %v584_v5 = vld [vmem:[%s2283_s5 + $0x1f0] sm:$0xff]  ;;  %v960_v23 = vld [vmem:[%s2282_s4 + $0x1] ss:$0 sm:$0xff] }
  0xbd   :  { %1364 = vmatprep.subr.bf16.mxu0 %v1363_v22  ;;  %1336 = vmatprep.subr.bf16.mxu1 %v1335_v31  ;;  %v959_v22 = vld [vmem:[%s2282_s4] ss:$0 sm:$0xff] }
  0xc0   :  { %1366 = vmatpush3.bf16.msra.mxu0 %v1365_v26  ;;  %1338 = vmatpush3.bf16.msra.mxu1 %v1337_v0  ;;  %v964_v26 = vld [vmem:[%s2282_s4 + $0x5] ss:$0 sm:$0xff] }
  0xc1   :  { %1368 = vmatprep.subr.bf16.mxu0 %v1367_v38  ;;  %1340 = vmatprep.subr.bf16.mxu1 %v1339_v44 }
  0xc4   :  { %1370 = vmatpush3.bf16.msra.mxu0 %v1369_v40  ;;  %1342 = vmatpush3.bf16.msra.mxu1 %v1341_v51  ;;  %v587_v51 = vld [vmem:[%s2283_s5 + $0x208] sm:$0xff] }
  0xc5   :  { %1372 = vmatprep.subr.bf16.mxu0 %v1371_v48  ;;  %1344 = vmatprep.subr.bf16.mxu1 %v1343_v56  ;;  %v619_v56 = vld [vmem:[%s2283_s5 + $0x308] sm:$0xff]  ;;  %v1385_v58 = vpack.c.bf16 %v587_v51, %v586_v50  ;;  %v626_v51 = vld [vmem:[%s2283_s5 + $0x340] sm:$0xff] }
  0xc8   :  { %1374 = vmatpush3.bf16.msra.mxu0 %v1373_v52  ;;  %1346 = vmatpush3.bf16.msra.mxu1 %v1345_v61  ;;  %v604_v52 = vld [vmem:[%s2283_s5 + $0x290] sm:$0xff] }
  0xc9   :  { %1376 = vmatprep.subr.bf16.mxu0 %v1375_v60  ;;  %v637_v60 = vld [vmem:[%s2283_s5 + $0x398] sm:$0xff]  ;;  %v1387_v62 = vpack.c.bf16 %v605_v53, %v604_v52  ;;  %v627_v52 = vld [vmem:[%s2283_s5 + $0x348] sm:$0xff] }
  0xcc   :  { %1378 = vmatpush3.bf16.msra.mxu0 %v1377_v2 }
 0x166   :  { %v1001_v6 = vpop.f32.mrb[0].mxu0 }
 0x167   :  { %v1036_v7 = vpop.f32.mrb[0].mxu1  ;;  %v1002_v9 = vpop.f32.mrb[1].mxu0 }
 0x168   :  { %v1003_v10 = vadd.f32 %v1002_v9, %v1001_v6  ;;  %v1037_v11 = vpop.f32.mrb[1].mxu1  ;;  %v585_v6 = vld [vmem:[%s2283_s5 + $0x1f8] sm:$0xff]  ;;  %v536_v9 = vld [vmem:[%s2283_s5 + $0x70] sm:$0xff] }
 0x169   :  { %v1038_v12 = vadd.f32 %v1037_v11, %v1036_v7  ;;  %v1347_v7 = vpack.c.bf16 %v553_v4, %v552_v1  ;;  %v568_v11 = vld [vmem:[%s2283_s5 + $0x170] sm:$0xff]  ;;  %v589_v1 = vld [vmem:[%s2283_s5 + $0x218] sm:$0xff]  ;;  %v1417_v4 = vpack.c.bf16 %v619_v56, %v618_v55 }
 0x16a   :  { %v265_v13 = vadd.f32 %v1003_v10, %v957_v8  ;;  %v1379_v8 = vpack.c.bf16 %v585_v6, %v584_v5  ;;  %v537_v10 = vld [vmem:[%s2283_s5 + $0x78] sm:$0xff]  ;;  %v606_v5 = vld [vmem:[%s2283_s5 + $0x2a0] sm:$0xff]  ;;  %v607_v6 = vld [vmem:[%s2283_s5 + $0x2a8] sm:$0xff] }
 0x16b   :  { %1348 = vmatprep.subr.bf16.mxu1 %v1347_v7  ;;  %v1391_v17 = vpack.c.bf16 %v607_v6, %v606_v5  ;;  %v644_v55 = vld [vmem:[%s2283_s5 + $0x3d0] sm:$0xff]  ;;  %v645_v56 = vld [vmem:[%s2283_s5 + $0x3d8] sm:$0xff] }
 0x16c   :  { %v335_v14 = vadd.f32 %v1038_v12, %v265_v13  ;;  %v1349_v12 = vpack.c.bf16 %v537_v10, %v536_v9  ;;  %v569_v13 = vld [vmem:[%s2283_s5 + $0x178] sm:$0xff]  ;;  %1380 = vmatprep.subr.bf16.mxu0 %v1379_v8  ;;  %v1419_v8 = vpack.c.bf16 %v637_v60, %v636_v59  ;;  %v620_v9 = vld [vmem:[%s2283_s5 + $0x310] sm:$0xff] }
 0x16d   :  { %v621_v10 = vld [vmem:[%s2283_s5 + $0x318] sm:$0xff] }
 0x16e   :  { %1350 = vmatpush3.bf16.msra.mxu1 %v1349_v12  ;;  %v638_v12 = vld [vmem:[%s2283_s5 + $0x3a0] sm:$0xff]  ;;  %v597_v59 = vld [vmem:[%s2283_s5 + $0x258] sm:$0xff] }
 0x16f   :  { %1384 = vmatprep.subr.bf16.mxu1 %v1383_v18  ;;  %v590_v18 = vld [vmem:[%s2283_s5 + $0x220] sm:$0xff] }
 0x186   :  { %v404_v30 = vpop.f32.mrb[2].mxu0 }
 0x187   :  { %v1950_v35 = vadd.f32 %v404_v30, %v335_v14  ;;  %v1230_v37 = vpop.f32.mrb[3].mxu0  ;;  %v1381_v14 = vpack.c.bf16 %v569_v13, %v568_v11  ;;  %v1389_v11 = vpack.c.bf16 %v589_v1, %v588_v63  ;;  %v639_v13 = vld [vmem:[%s2283_s5 + $0x3a8] sm:$0xff]  ;;  %v1435_v1 = vpack.c.bf16 %v645_v56, %v644_v55 }
 0x188   :  { %v615_v63 = vld [vmem:[%s2283_s5 + $0x2e8] sm:$0xff] }
 0x189   :  { %v1959_v41 = vmul.f32 3.535534, %v1950_v35  ;;  %1382 = vmatpush3.bf16.msra.mxu0 %v1381_v14  ;;  %v958_v21 = vmul.f32 -1.442695, %v1950_v35 }
 0x18a   :  { %1416 = vmatprep.subr.bf16.mxu0 %v1415_v20  ;;  %v1421_v20 = vpack.c.bf16 %v621_v10, %v620_v9  ;;  %v598_v10 = vld [vmem:[%s2283_s5 + $0x260] sm:$0xff] }
 0x18b   :  { %419 = vrot.lane.b32.xlu1 %v1959_v41, %s1510_s14  ;;  %1466 = vpow2.f32 %v958_v21  ;;  %v609_v21 = vld [vmem:[%s2283_s5 + $0x2b8] sm:$0xff] }
 0x195   :  { %v1467_v29 = vpop.eup %1466 }
 0x196   :  { %v411_v39 = vadd.f32 1.0, %v1467_v29  ;;  %v640_v29 = vld [vmem:[%s2283_s5 + $0x3b0] sm:$0xff] }
 0x198   :  { %1468 = vrcp.f32 %v411_v39  ;;  %v624_v39 = vld [vmem:[%s2283_s5 + $0x330] sm:$0xff] }
 0x1a2   :  { %v1469_v54 = vpop.eup %1468 }
 0x1a3   :  { %v414_v15 = vmul.f32 %v1469_v54, %v1950_v35  ;;  %v608_v35 = vld [vmem:[%s2283_s5 + $0x2b0] sm:$0xff] }
 0x1fd   :  { %v420_v27 = vpop.permute.xlu1 %419 }
 0x1fe   :  { %v2065_v28 = vsel %vm50_vm1, %v1959_v41, %v420_v27  ;;  %v1393_v27 = vpack.c.bf16 %v591_v19, %v590_v18  ;;  %v631_v18 = vld [vmem:[%s2283_s5 + $0x368] sm:$0xff] }
 0x1ff   :  { %v430_v30 = vsub.f32 %v2065_v28, %v959_v22  ;;  %v443_v31 = vsub.f32 %v2065_v28, %v960_v23  ;;  %v456_v32 = vsub.f32 %v2065_v28, %v961_v24  ;;  %v469_v33 = vsub.f32 %v2065_v28, %v962_v25  ;;  %v965_v22 = vld [vmem:[%s2282_s4 + $0x6] ss:$0 sm:$0xff]  ;;  %v623_v25 = vld [vmem:[%s2283_s5 + $0x328] sm:$0xff] }
 0x200   :  { %v495_v34 = vsub.f32 %v2065_v28, %v964_v26  ;;  %v1423_v23 = vpack.c.bf16 %v639_v13, %v638_v12  ;;  %v622_v24 = vld [vmem:[%s2283_s5 + $0x320] sm:$0xff]  ;;  %v482_v26 = vsub.f32 %v2065_v28, %v963_v16 }
 0x201   :  { %v431_v37 = vmul.f32 %v430_v30, %v430_v30  ;;  %v444_v38 = vmul.f32 %v443_v31, %v443_v31  ;;  %v457_v0 = vmul.f32 %v456_v32, %v456_v32  ;;  %v470_v36 = vmul.f32 %v469_v33, %v469_v33  ;;  %v641_v30 = vld [vmem:[%s2283_s5 + $0x3b8] sm:$0xff]  ;;  %v592_v32 = vld [vmem:[%s2283_s5 + $0x230] sm:$0xff] }
 0x202   :  { %v496_v40 = vmul.f32 %v495_v34, %v495_v34  ;;  %v1395_v31 = vpack.c.bf16 %v609_v21, %v608_v35  ;;  %v593_v33 = vld [vmem:[%s2283_s5 + $0x238] sm:$0xff]  ;;  %v508_v34 = vsub.f32 %v2065_v28, %v965_v22  ;;  %v600_v22 = vld [vmem:[%s2283_s5 + $0x270] sm:$0xff] }
 0x203   :  { %v432_v42 = vsub.f32 0.0, %v431_v37  ;;  %v445_v41 = vsub.f32 0.0, %v444_v38  ;;  %v458_v43 = vsub.f32 0.0, %v457_v0  ;;  %v471_v44 = vsub.f32 0.0, %v470_v36  ;;  %v610_v38 = vld [vmem:[%s2283_s5 + $0x2c0] sm:$0xff]  ;;  %v611_v0 = vld [vmem:[%s2283_s5 + $0x2c8] sm:$0xff] }
 0x204   :  { %v497_v45 = vsub.f32 0.0, %v496_v40  ;;  %v1425_v37 = vpack.c.bf16 %v623_v25, %v622_v24  ;;  %v1427_v36 = vpack.c.bf16 %v641_v30, %v640_v29  ;;  %v625_v28 = vld [vmem:[%s2283_s5 + $0x338] sm:$0xff]  ;;  %v483_v40 = vmul.f32 %v482_v26, %v482_v26  ;;  %v632_v26 = vld [vmem:[%s2283_s5 + $0x370] sm:$0xff] }
 0x205   :  { %v433_v46 = vmul.f32 1.442695, %v432_v42  ;;  %v446_v47 = vmul.f32 1.442695, %v445_v41  ;;  %v459_v48 = vmul.f32 1.442695, %v458_v43  ;;  %v1397_v42 = vpack.c.bf16 %v593_v33, %v592_v32 }
 0x206   :  { %v472_v49 = vmul.f32 1.442695, %v471_v44  ;;  %v498_v3 = vmul.f32 1.442695, %v497_v45  ;;  %v642_v41 = vld [vmem:[%s2283_s5 + $0x3c0] sm:$0xff]  ;;  %v643_v43 = vld [vmem:[%s2283_s5 + $0x3c8] sm:$0xff]  ;;  %v1399_v44 = vpack.c.bf16 %v611_v0, %v610_v38 }
 0x207   :  { %1470 = vpow2.f32 %v433_v46  ;;  %v594_v45 = vld [vmem:[%s2283_s5 + $0x240] sm:$0xff]  ;;  %v595_v46 = vld [vmem:[%s2283_s5 + $0x248] sm:$0xff]  ;;  %v1431_v50 = vpack.c.bf16 %v643_v43, %v642_v41  ;;  %v484_v53 = vsub.f32 0.0, %v483_v40  ;;  %v649_v35 = vld [vmem:[%s2283_s5 + $0x3f8] sm:$0xff] }
 0x208   :  { %1472 = vpow2.f32 %v446_v47  ;;  %v509_v47 = vmul.f32 %v508_v34, %v508_v34  ;;  %v1401_v54 = vpack.c.bf16 %v595_v46, %v594_v45  ;;  %v966_v34 = vld [vmem:[%s2284_s6] ss:$0 sm:$0xff] }
 0x209   :  { %1474 = vpow2.f32 %v459_v48  ;;  %v1429_v48 = vpack.c.bf16 %v625_v28, %v624_v39  ;;  %v485_v5 = vmul.f32 1.442695, %v484_v53 }
 0x20a   :  { %1476 = vpow2.f32 %v472_v49  ;;  %v612_v49 = vld [vmem:[%s2283_s5 + $0x2d0] sm:$0xff]  ;;  %v510_v60 = vsub.f32 0.0, %v509_v47 }
 0x20b   :  { %1478 = vpow2.f32 %v498_v3  ;;  %v613_v3 = vld [vmem:[%s2283_s5 + $0x2d8] sm:$0xff] }
 0x20c   :  { %v511_v12 = vmul.f32 1.442695, %v510_v60  ;;  %1480 = vpow2.f32 %v485_v5 }
 0x20e   :  { %1482 = vpow2.f32 %v511_v12 }
 0x211   :  { %v1471_v57 = vpop.eup %1470 }
 0x212   :  { %v1473_v61 = vpop.eup %1472 }
 0x213   :  { %v1475_v2 = vpop.eup %1474  ;;  %721 = vmatprep.mubr.f32.mxu1 %v1473_v61  ;;  %v1433_v61 = vpack.c.bf16 %v627_v52, %v626_v51 }
 0x214   :  { %v1477_v7 = vpop.eup %1476  ;;  %722 = vmatmul.mubr.f32.vlgmr.msra.gmra.mrb[2].mxu1 %v1471_v57  ;;  %v1403_v57 = vpack.c.bf16 %v613_v3, %v612_v49 }
 0x215   :  { %791 = vmatprep.mubr.f32.mxu0 %v1477_v7  ;;  %1386 = vmatpush3.bf16.msra.mxu1 %v1385_v58  ;;  %v1479_v14 = vpop.eup %1478  ;;  %v596_v58 = vld [vmem:[%s2283_s5 + $0x250] sm:$0xff]  ;;  %v646_v7 = vld [vmem:[%s2283_s5 + $0x3e0] sm:$0xff] }
 0x216   :  { %792 = vmatmul.mubr.f32.vlgmr.msra.gmra.mrb[4].mxu0 %v1475_v2  ;;  %1388 = vmatprep.subr.bf16.mxu1 %v1387_v62  ;;  %v614_v62 = vld [vmem:[%s2283_s5 + $0x2e0] sm:$0xff]  ;;  %v628_v2 = vld [vmem:[%s2283_s5 + $0x350] sm:$0xff]  ;;  %v1405_v6 = vpack.c.bf16 %v597_v59, %v596_v58 }
 0x217   :  { %1418 = vmatpush3.bf16.msra.mxu0 %v1417_v4  ;;  %861 = vmatprep.mubr.f32.mxu1 %v1479_v14  ;;  %v629_v4 = vld [vmem:[%s2283_s5 + $0x358] sm:$0xff]  ;;  %v1407_v9 = vpack.c.bf16 %v615_v63, %v614_v62  ;;  %v616_v14 = vld [vmem:[%s2283_s5 + $0x2f0] sm:$0xff] }
 0x218   :  { %968 = vmatprep.mubr.msk.f32.mxu0 %vm50_vm1, %v414_v15  ;;  %1420 = vmatprep.subr.bf16.mxu0 %v1419_v8  ;;  %v647_v8 = vld [vmem:[%s2283_s5 + $0x3e8] sm:$0xff]  ;;  %v1437_v13 = vpack.c.bf16 %v629_v4, %v628_v2  ;;  %v617_v15 = vld [vmem:[%s2283_s5 + $0x2f8] sm:$0xff] }
 0x219   :  { %1390 = vmatpush3.bf16.msra.mxu1 %v1389_v11  ;;  %v599_v11 = vld [vmem:[%s2283_s5 + $0x268] sm:$0xff]  ;;  %v1439_v16 = vpack.c.bf16 %v647_v8, %v646_v7  ;;  %v1411_v21 = vpack.c.bf16 %v617_v15, %v616_v14 }
 0x21a   :  { %1392 = vmatprep.subr.bf16.mxu1 %v1391_v17  ;;  %v630_v17 = vld [vmem:[%s2283_s5 + $0x360] sm:$0xff]  ;;  %v1409_v19 = vpack.c.bf16 %v599_v11, %v598_v10 }
 0x21b   :  { %1422 = vmatpush3.bf16.msra.mxu0 %v1421_v20  ;;  %v648_v20 = vld [vmem:[%s2283_s5 + $0x3f0] sm:$0xff]  ;;  %v1441_v24 = vpack.c.bf16 %v631_v18, %v630_v17 }
 0x21c   :  { %1424 = vmatprep.subr.bf16.mxu0 %v1423_v23  ;;  %v601_v23 = vld [vmem:[%s2283_s5 + $0x278] sm:$0xff]  ;;  %v1443_v25 = vpack.c.bf16 %v649_v35, %v648_v20 }
 0x21d   :  { %1394 = vmatpush3.bf16.msra.mxu1 %v1393_v27  ;;  %v633_v27 = vld [vmem:[%s2283_s5 + $0x378] sm:$0xff]  ;;  %v1413_v29 = vpack.c.bf16 %v601_v23, %v600_v22  ;;  %s1514_s5 = smov [#allocation4]  }
 0x21e   :  { %1396 = vmatprep.subr.bf16.mxu1 %v1395_v31  ;;  %v1445_v30 = vpack.c.bf16 %v633_v27, %v632_v26  ;;  %v1481_v31 = vpop.eup %1480  ;;  %s944_s3 = sshll.u32 %s1514_s5, 4  ;;  %s945_s3 = int_to_ptr.vmem [resolvable:$true] %s944_s3 }
 0x21f   :  { %1426 = vmatpush3.bf16.msra.mxu0 %v1425_v37  ;;  %v1483_v32 = vpop.eup %1482  ;;  %s1484_s6 = scalar_lea.vmem %s945_s3, 128  ;;  %p1489_p1 = scmp.lt.s32.totalorder %s945_s3, %s945_s3 }
 0x220   :  { %1428 = vmatprep.subr.bf16.mxu0 %v1427_v36  ;;  %p1485_p0 = scmp.ne.s32.totalorder %s945_s3, %s1484_s6  ;;  %p1490_p2 = scmp.lt.s32.totalorder %s1484_s6, %s1484_s6 }
 0x221   :  { %1398 = vmatpush3.bf16.msra.mxu1 %v1397_v42 }
 0x222   :  { %1400 = vmatprep.subr.bf16.mxu1 %v1399_v44  ;;  %p1491_p3 = por %p1490_p2, %p1489_p1 }
 0x223   :  { %1430 = vmatpush3.bf16.msra.mxu0 %v1429_v48 }
 0x224   :  { %1432 = vmatprep.subr.bf16.mxu0 %v1431_v50  ;;  %p1492_p4 = pnand %p1491_p3, %p1485_p0 }
 0x225   :  { %1402 = vmatpush3.bf16.msra.mxu1 %v1401_v54 }
 0x226   :  { %1404 = vmatprep.subr.bf16.mxu1 %v1403_v57 }
 0x227   :  { %1434 = vmatpush3.bf16.msra.mxu0 %v1433_v61 }
 0x228   :  { %1436 = vmatprep.subr.bf16.mxu0 %v1435_v1 }
 0x229   :  { %1406 = vmatpush3.bf16.msra.mxu1 %v1405_v6 }
 0x22a   :  { %1408 = vmatprep.subr.bf16.mxu1 %v1407_v9 }
 0x22b   :  { %1438 = vmatpush3.bf16.msra.mxu0 %v1437_v13 }
 0x22c   :  { %1440 = vmatprep.subr.bf16.mxu0 %v1439_v16 }
 0x22d   :  { %1410 = vmatpush3.bf16.msra.mxu1 %v1409_v19 }
 0x22e   :  { %1412 = vmatprep.subr.bf16.mxu1 %v1411_v21 }
 0x22f   :  { %1442 = vmatpush3.bf16.msra.mxu0 %v1441_v24 }
 0x230   :  { %1444 = vmatprep.subr.bf16.mxu0 %v1443_v25 }
 0x231   :  { %1414 = vmatpush3.bf16.msra.mxu1 %v1413_v29 }
 0x233   :  { %1446 = vmatpush3.bf16.msra.mxu0 %v1445_v30 }
 0x234   :  { %862 = vmatmul.mubr.f32.vlgmr.msra.gmra.mrb[4].mxu1 %v1481_v31 }
 0x236   :  { %932 = vmatmul.mubr.f32.vlgmr.msra.gmra.mrb[6].mxu0 %v1483_v32 }
 0x2e7   :  { %v1088_v33 = vpop.f32.mrb[2].mxu1 }
 0x2e8   :  { %v1089_v37 = vpop.f32.mrb[3].mxu1 }
 0x2e9   :  { %v1123_v38 = vpop.f32.mrb[4].mxu0  ;;  %v1090_v0 = vadd.f32 %v1089_v37, %v1088_v33 }
 0x2ea   :  { %v1124_v36 = vpop.f32.mrb[5].mxu0 }
 0x2eb   :  { %v724_v39 = vadd.f32 %v1090_v0, %v966_v34  ;;  %v1125_v28 = vadd.f32 %v1124_v36, %v1123_v38 }
 0x2ed   :  { %v794_v40 = vadd.f32 %v1125_v28, %v724_v39 }
 0x307   :  { %v1158_v42 = vpop.f32.mrb[4].mxu1 }
 0x308   :  { %v1159_v41 = vpop.f32.mrb[5].mxu1 }
 0x309   :  { %v1193_v43 = vpop.f32.mrb[6].mxu0  ;;  %v1160_v44 = vadd.f32 %v1159_v41, %v1158_v42 }
 0x30a   :  { %v1194_v45 = vpop.f32.mrb[7].mxu0 }
 0x30b   :  { %v864_v46 = vadd.f32 %v1160_v44, %v794_v40  ;;  %v1195_v47 = vadd.f32 %v1194_v45, %v1193_v43 }
 0x30d   :  { %v934_v48 = vadd.f32 %v1195_v47, %v864_v46 }
 0x30f   :  { %937 = vst.msk [vmem:[#allocation4] sm:$0xff] %vm35_vm0, %v934_v48 }
 0x310   :  { %1495 = shalt.err (!%p1492_p4)
}
 0x311   :  { %s1496_s16 = scalar_lea.hbm %s2285_s7, 128 }
 0x312   :  { %p1497_p5 = scmp.ne.s32.totalorder %s2285_s7, %s1496_s16  ;;  %p1500_p6 = scmp.lt.u32.totalorder %s1496_s16, %s2285_s7 }
 0x314   :  { %p1502_p7 = pnand %p1500_p6, %p1497_p5 }
 0x316   :  { %1505 = shalt.err (!%p1502_p7)
}
 0x317   :  { %947 = dma.vmem_to_hbm [thread:$0]  %s945_s3, 128, %s2285_s7, [#allocation5]  }
 0x318   :  { %1506 = dma.done.wait [#allocation5], 128  }
 0x319   :  { %1507 = vsyncadd [#allocation5], 4294967168 }
 0x31a   :  { %951 = vsyncpa [#allocation5], 1 }

</bundles_post_ra>
